<compile_context>
chip_gen: v7x
topology: tpu7x:2x2x1
jax: 0.10.0
libtpu: 0.0.40
codegen_flags: <defaults>
</compile_context>

<pallas_src>
import functools

import jax
import jax.numpy as jnp
from jax import lax
from jax.experimental import pallas as pl
from jax.experimental.pallas import tpu as pltpu

_LANE = 128
_SUB = 8
# Real (unpadded) input bytes per grid step.  Double-buffered this stays well
# under the default scoped VMEM on every generation (v5e 16 MiB, v6e/v7x 32 MiB)
# and ~85%+ of HBM roofline per the measured tile-size scaling.
_PER_STEP_INPUT_BUDGET = 4 * 1024 * 1024


def _round_up(x, m):
    return (x + m - 1) // m * m


def _round_down(x, m):
    return x // m * m


def _largest_divisor_leq(n, cap):
    cap = max(1, min(n, cap))
    for d in range(cap, 0, -1):
        if n % d == 0:
            return d
    return 1


def _sublane_pack(itemsize):
    # Second-minor granularity of the native VMEM tile: f32->8, bf16->16, int8->32.
    return 32 // itemsize


def _dice_partial_kernel(p_ref, m_ref, inter_ref, card_ref, *,
                         C, bn, rows_tile, ch, r_true, mask_rows,
                         card_without_mask, reg_acc):
    """One grid step: accumulate (C, ch, 128) lane-wise partial sums over a
    (bn, C, rows_tile, 128) tile, chunk by chunk (pure VPU adds; no tile-sized
    intermediates, no in-kernel cross-lane reductions)."""
    n_chunks = rows_tile // ch
    total = bn * n_chunks
    row_base = pl.program_id(1) * rows_tile

    def chunk(t):
        b = t // n_chunks
        jc = t % n_chunks
        if isinstance(jc, int):
            r0 = jc * ch
        else:
            r0 = pl.multiple_of(jc * ch, ch)
        p = p_ref[b, :, pl.ds(r0, ch), :].astype(jnp.float32)
        m = m_ref[b, :, pl.ds(r0, ch), :].astype(jnp.float32)
        if mask_rows:
            # The last row-block may overrun R; OOB reads are garbage -> mask.
            rows = (lax.broadcasted_iota(jnp.int32, (C, ch, _LANE), 1)
                    + row_base + jc * ch)
            valid = rows < r_true
            zero = jnp.zeros_like(p)
            p = jnp.where(valid, p, zero)
            m = jnp.where(valid, m, zero)
        ci = p * m
        cc = p if card_without_mask else (p + m)
        return ci, cc

    if reg_acc:
        zero = jnp.zeros((C, ch, _LANE), jnp.float32)
        if total <= 8:
            acc_i, acc_c = zero, zero
            for t in range(total):
                ci, cc = chunk(t)
                acc_i = acc_i + ci
                acc_c = acc_c + cc
        else:
            def body(t, carry):
                acc_i, acc_c = carry
                ci, cc = chunk(t)
                return acc_i + ci, acc_c + cc
            acc_i, acc_c = lax.fori_loop(0, total, body, (zero, zero), unroll=4)
        inter_ref[...] = acc_i
        card_ref[...] = acc_c
    else:
        # Large C: keep the live vreg set tiny by accumulating into the output
        # VMEM refs directly.
        inter_ref[...] = jnp.zeros_like(inter_ref)
        card_ref[...] = jnp.zeros_like(card_ref)

        def body(t, carry):
            ci, cc = chunk(t)
            inter_ref[...] += ci
            card_ref[...] += cc
            return carry
        lax.fori_loop(0, total, body, 0)


def dice_loss(model_output, target, eps=1e-7):
    """Pallas implementation of DiceLoss.forward."""
    N, C, H, W = model_output.shape
    HW = H * W
    p_bytes = model_output.dtype.itemsize

    # --- flat-reshape one-hot (faithful to torch `.reshape(probas.shape)`) ----
    probas = jnp.reshape(model_output, (N, C, HW))
    tgt = jnp.squeeze(target, axis=1).astype(jnp.int32)
    # TODO(synk): building the one-hot in-kernel from raw labels would save one
    # HBM pass, but the flat-reshape semantics need a per-lane gather on TPU.
    mask = jax.nn.one_hot(tgt, C, dtype=jnp.int8).reshape(N, C, HW)

    # --- lane-dense 4D view: (N, C, R, 128) -----------------------------------
    HWp = _round_up(HW, _LANE)
    if HWp != HW:
        # Only when HW is not lane-aligned; zeros are neutral for both sums.
        probas = jnp.pad(probas, ((0, 0), (0, 0), (0, HWp - HW)))
        mask = jnp.pad(mask, ((0, 0), (0, 0), (0, HWp - HW)))
    R = HWp // _LANE
    probas = probas.reshape(N, C, R, _LANE)
    mask = mask.reshape(N, C, R, _LANE)

    # --- row-tile selection (second-minor of the input block) -----------------
    bytes_per_row = C * _LANE * (p_bytes + 1)            # activations + int8 mask
    cap_rows = max(32, _round_down(_PER_STEP_INPUT_BUDGET // bytes_per_row, 32))
    if R <= cap_rows and (R <= _SUB or R % _SUB == 0):
        rows_tile = R                                    # single block or exact fit
    elif R >= 32:
        rows_tile = min(cap_rows, max(32, _round_down(R, 32)))
        # Prefer a balanced tile that divides R exactly (no masked tail).
        gr0 = pl.cdiv(R, rows_tile)
        balanced = max(32, _round_down(pl.cdiv(R, gr0), 32))
        if R % balanced == 0:
            rows_tile = balanced
    else:                                                # 8 < R < 32, ragged: one block
        rows_tile = R

    # --- batch block: largest divisor of N that fits the per-step budget ------
    per_batch = rows_tile * _LANE * C * (p_bytes + 1)
    bn = _largest_divisor_leq(N, max(1, _PER_STEP_INPUT_BUDGET // per_batch))
    gb, gr = N // bn, pl.cdiv(R, rows_tile)

    # Keep >= 2 grid steps when possible so the second v7x TensorCore has work.
    if gb * gr < 2:
        if N > 1:
            bn = _largest_divisor_leq(N, N // 2)
            gb = N // bn
        elif R >= 64:
            rows_tile = max(32, _round_down(pl.cdiv(R, 2), 32))
            gr = pl.cdiv(R, rows_tile)

    mask_rows = (R % rows_tile) != 0
    ch = max(d for d in range(1, min(rows_tile, _SUB) + 1) if rows_tile % d == 0)
    card_without_mask = (HW % C == 0)
    reg_acc = (C <= 16)

    # --- explicit VMEM budget (account for per-dtype sublane padding) ---------
    def _pad_rows(r, itemsize):
        return _round_up(r, _sublane_pack(itemsize))

    in_step = bn * C * _LANE * (_pad_rows(rows_tile, p_bytes) * p_bytes
                                + _pad_rows(rows_tile, 1))
    out_step = 2 * C * _pad_rows(ch, 4) * _LANE * 4
    vmem_limit = int(2 * (in_step + out_step) + (8 << 20))   # double-buffer + slack

    kernel = functools.partial(
        _dice_partial_kernel, C=C, bn=bn, rows_tile=rows_tile, ch=ch,
        r_true=R, mask_rows=mask_rows,
        card_without_mask=card_without_mask, reg_acc=reg_acc)

    inter_p, card_p = pl.pallas_call(
        kernel,
        out_shape=(
            jax.ShapeDtypeStruct((gb, gr, C, ch, _LANE), jnp.float32),
            jax.ShapeDtypeStruct((gb, gr, C, ch, _LANE), jnp.float32),
        ),
        grid=(gb, gr),
        in_specs=[
            pl.BlockSpec((bn, C, rows_tile, _LANE), lambda i, j: (i, 0, j, 0)),
            pl.BlockSpec((bn, C, rows_tile, _LANE), lambda i, j: (i, 0, j, 0)),
        ],
        out_specs=(
            pl.BlockSpec((None, None, C, ch, _LANE), lambda i, j: (i, j, 0, 0, 0)),
            pl.BlockSpec((None, None, C, ch, _LANE), lambda i, j: (i, j, 0, 0, 0)),
        ),
        compiler_params=pltpu.CompilerParams(
            dimension_semantics=("parallel", "parallel"),
            vmem_limit_bytes=vmem_limit),
    )(probas, mask)

    # Tiny final combine in plain JAX / f32.
    intersection = jnp.sum(inter_p, axis=(0, 1, 3, 4))    # (C,)
    cardinality = jnp.sum(card_p, axis=(0, 1, 3, 4))      # (C,)
    if card_without_mask:
        # Exact ones-count per class of the flat-reshaped one-hot when C | H*W.
        cardinality = cardinality + jnp.float32(N * HW // C)
    dice = 2.0 * intersection / (cardinality + eps)
    return 1.0 - jnp.mean(dice)


def dice_loss_ref(model_output, target, eps=1e-7):
    """Pure-JAX reference mirroring the PyTorch module exactly."""
    C = model_output.shape[1]
    probas = model_output.astype(jnp.float32)
    tgt = jnp.squeeze(target, axis=1).astype(jnp.int32)
    one_hot = jax.nn.one_hot(tgt, C, dtype=probas.dtype).reshape(probas.shape)
    dims = (0, 2, 3)
    intersection = jnp.sum(probas * one_hot, dims)
    cardinality = jnp.sum(probas + one_hot, dims)
    dice = jnp.mean(2.0 * intersection / (cardinality + eps))
    return 1.0 - dice


if __name__ == "__main__":
    key = jax.random.PRNGKey(0)
    k1, k2 = jax.random.split(key)
    N, C, H, W = 2, 4, 16, 16
    model_output = jax.random.normal(k1, (N, C, H, W), dtype=jnp.float32)
    target = jax.random.randint(k2, (N, 1, H, W), 0, C, dtype=jnp.int32)

    loss = jax.jit(dice_loss)(model_output, target)
    jax.block_until_ready(loss)

    ref = dice_loss_ref(model_output, target)
    assert jnp.allclose(loss, ref, atol=1e-5, rtol=1e-5), (loss, ref)
    print("KERNEL_OK")
</pallas_src>

<mosaic_0001>
module attributes {stable_mosaic.version = 11 : i64} {
  func.func @_dice_partial_kernel(%arg0: i32, %arg1: i32, %arg2: memref<1x4x2x128xf32, #tpu.memory_space<vmem>>, %arg3: memref<1x4x2x128xi8, #tpu.memory_space<vmem>>, %arg4: memref<1x1x4x2x128xf32, #tpu.memory_space<vmem>>, %arg5: memref<1x1x4x2x128xf32, #tpu.memory_space<vmem>>) attributes {dimension_semantics = [#tpu.dimension_semantics<parallel>, #tpu.dimension_semantics<parallel>], iteration_bounds = array<i64: 2, 1>, scalar_prefetch = 0 : i64, scratch_operands = 0 : i64, tpu.core_type = #tpu.core_type<tc>, window_params = [{transform_indices = @transform_0, window_bounds = array<i64: 1, 4, 2, 128>}, {transform_indices = @transform_1, window_bounds = array<i64: 1, 4, 2, 128>}, {transform_indices = @transform_2, window_bounds = array<i64: 1, 1, 4, 2, 128>}, {transform_indices = @transform_3, window_bounds = array<i64: 1, 1, 4, 2, 128>}]} {
    %cst = arith.constant 0.000000e+00 : f32
    %0 = vector.broadcast %cst : f32 to vector<4x2x128xf32>
    %c0 = arith.constant 0 : index
    %c0_0 = arith.constant 0 : index
    %c0_1 = arith.constant 0 : index
    %c0_2 = arith.constant 0 : index
    %1 = vector.load %arg2[%c0, %c0_0, %c0_1, %c0_2] : memref<1x4x2x128xf32, #tpu.memory_space<vmem>>, vector<1x4x2x128xf32>
    %2 = vector.shape_cast %1 : vector<1x4x2x128xf32> to vector<4x2x128xf32>
    %c0_3 = arith.constant 0 : index
    %c0_4 = arith.constant 0 : index
    %c0_5 = arith.constant 0 : index
    %c0_6 = arith.constant 0 : index
    %3 = vector.load %arg3[%c0_3, %c0_4, %c0_5, %c0_6] : memref<1x4x2x128xi8, #tpu.memory_space<vmem>>, vector<1x4x2x128xi8>
    %4 = vector.shape_cast %3 : vector<1x4x2x128xi8> to vector<4x2x128xi8>
    %5 = arith.sitofp %4 : vector<4x2x128xi8> to vector<4x2x128xf32>
    %6 = arith.mulf %2, %5 : vector<4x2x128xf32>
    %7 = arith.addf %0, %6 : vector<4x2x128xf32>
    %8 = arith.addf %0, %2 : vector<4x2x128xf32>
    %c0_7 = arith.constant 0 : index
    %c0_8 = arith.constant 0 : index
    %c0_9 = arith.constant 0 : index
    %c0_10 = arith.constant 0 : index
    %c0_11 = arith.constant 0 : index
    %9 = vector.load %arg4[%c0_7, %c0_8, %c0_9, %c0_10, %c0_11] : memref<1x1x4x2x128xf32, #tpu.memory_space<vmem>>, vector<1x1x4x2x128xf32>
    %10 = vector.shape_cast %9 : vector<1x1x4x2x128xf32> to vector<4x2x128xf32>
    %11 = vector.shape_cast %7 : vector<4x2x128xf32> to vector<1x1x4x2x128xf32>
    tpu.vector_store %arg4[%c0_7, %c0_8, %c0_9, %c0_10, %c0_11], %11 {strides = array<i32>} : memref<1x1x4x2x128xf32, #tpu.memory_space<vmem>>, vector<1x1x4x2x128xf32>,
    %c0_12 = arith.constant 0 : index
    %c0_13 = arith.constant 0 : index
    %c0_14 = arith.constant 0 : index
    %c0_15 = arith.constant 0 : index
    %c0_16 = arith.constant 0 : index
    %12 = vector.load %arg5[%c0_12, %c0_13, %c0_14, %c0_15, %c0_16] : memref<1x1x4x2x128xf32, #tpu.memory_space<vmem>>, vector<1x1x4x2x128xf32>
    %13 = vector.shape_cast %12 : vector<1x1x4x2x128xf32> to vector<4x2x128xf32>
    %14 = vector.shape_cast %8 : vector<4x2x128xf32> to vector<1x1x4x2x128xf32>
    tpu.vector_store %arg5[%c0_12, %c0_13, %c0_14, %c0_15, %c0_16], %14 {strides = array<i32>} : memref<1x1x4x2x128xf32, #tpu.memory_space<vmem>>, vector<1x1x4x2x128xf32>,
    return
  }
  func.func @transform_0(%arg0: i32, %arg1: i32) -> (i32, i32, i32, i32) {
    %c0_i32 = arith.constant 0 : i32
    %c0_i32_0 = arith.constant 0 : i32
    %c0_i32_1 = arith.constant 0 : i32
    return %arg0, %c0_i32, %arg1, %c0_i32_0 : i32, i32, i32, i32
  }
  func.func @transform_1(%arg0: i32, %arg1: i32) -> (i32, i32, i32, i32) {
    %c0_i32 = arith.constant 0 : i32
    %c0_i32_0 = arith.constant 0 : i32
    %c0_i32_1 = arith.constant 0 : i32
    return %arg0, %c0_i32, %arg1, %c0_i32_0 : i32, i32, i32, i32
  }
  func.func @transform_2(%arg0: i32, %arg1: i32) -> (i32, i32, i32, i32, i32) {
    %c0_i32 = arith.constant 0 : i32
    %c0_i32_0 = arith.constant 0 : i32
    %c0_i32_1 = arith.constant 0 : i32
    %c0_i32_2 = arith.constant 0 : i32
    return %arg0, %arg1, %c0_i32, %c0_i32_0, %c0_i32_1 : i32, i32, i32, i32, i32
  }
  func.func @transform_3(%arg0: i32, %arg1: i32) -> (i32, i32, i32, i32, i32) {
    %c0_i32 = arith.constant 0 : i32
    %c0_i32_0 = arith.constant 0 : i32
    %c0_i32_1 = arith.constant 0 : i32
    %c0_i32_2 = arith.constant 0 : i32
    return %arg0, %arg1, %c0_i32, %c0_i32_0, %c0_i32_1 : i32, i32, i32, i32, i32
  }
}

</mosaic_0001>

<bundles_post_ra>
// kernel: dice_loss.1
= control target key start
LH: loop header
LB: loop body
LE: loop exit
PB: predicated region body
PF: predicated region fallthrough
CT: control target
= control target key end

     0   :  { %s533_s12 = smov 0   ;;  %s535_s13 = smov 0   ;;  %s572_s0 = inlined_call_operand.vmem [shape: f32[2,4,2,128], index: 0, kind: input, shape index: {}]   ;;  %s573_s1 = inlined_call_operand.vmem [shape: s8[2,4,2,128], index: 1, kind: input, shape index: {}]   ;;  %s574_s2 = inlined_call_operand.vmem [shape: f32[2,1,4,2,128], index: 2, kind: output, shape index: {0}]   ;;  %s575_s3 = inlined_call_operand.vmem [shape: f32[2,1,4,2,128], index: 3, kind: output, shape index: {1}]  }
   0x1   :  { %s537_s14 = smov 0  }
   0x2 LB: > { %s26_s15 = sadd.s32 1, %s507_s13  ;;  %p452_p0 = scmp.ge.s32.totalorder %s511_s14, 1  ;;  %s511_s14 = sphi %s537_s14, %s14_s14   ;;  %s507_s13 = sphi %s535_s13, %s577_s13   ;;  %s503_s12 = sphi %s533_s12, %s576_s12  }
   0x3   : > { %p28_p1 = scmp.ge.s32.totalorder %s26_s15, 2  ;;  %p175_p2 = scmp.lt.s32.totalorder %s511_s14, 3 }
   0x5   : > { %s579_s15 = smov (%p28_p1, %s26_s15), 0  ;;  %p176_p3 = pnand %p452_p0, %p175_p2 }
   0x6   : > { %p222_p4 = scmp.lt.s32.totalorder (!%p176_p3), %s503_s12, 1 }
   0x7   : > { %179 = sbr.rel (%p176_p3) target bundleno = 28 (0x1c), region = 28 }
   0xe   : > { %s581_s12 = smov (!%p222_p4, %s503_s12), 1 }
   0xf   : > { %s462_s16 = sshll.u32 %s581_s12, 3  ;;  %s455_s17 = sshll.u32 %s581_s12, 2 }
  0x10   : > { %s229_s20 = scalar_lea.vmem %s572_s0, %s462_s16  ;;  %s236_s23 = scalar_lea.vmem %s573_s1, %s455_s17 }
  0x11   : > { %v255_v0 = vld [vmem:[%s229_s20] sm:$0x3]  ;;  %v256_v2 = vld [vmem:[%s229_s20 + $0x2] sm:$0x3]  ;;  %s254_s26 = scalar_lea.vmem %s575_s3, %s462_s16  ;;  %v257_v5 = vld [vmem:[%s229_s20 + $0x4] sm:$0x3]  ;;  %s245_s29 = scalar_lea.vmem %s574_s2, %s462_s16 }
  0x12   : > { %v259_v1 = vld [vmem:[%s236_s23] sm:$0x1]  ;;  %v260_v4 = vld [vmem:[%s236_s23 + $0x1] sm:$0x1]  ;;  %v261_v6 = vld [vmem:[%s236_s23 + $0x2] sm:$0x1] }
  0x13   : > { %v263_v3 = vunpack.c.0.s8 %v259_v1  ;;  %287 = vst [vmem:[%s254_s26] sm:$0x3] %v255_v0  ;;  %288 = vst [vmem:[%s254_s26 + $0x2] sm:$0x3] %v256_v2  ;;  %v264_v7 = vunpack.c.0.s8 %v260_v4  ;;  %v265_v8 = vunpack.c.0.s8 %v261_v6  ;;  %v258_v9 = vld [vmem:[%s229_s20 + $0x6] sm:$0x3] }
  0x14   : > { %v262_v10 = vld [vmem:[%s236_s23 + $0x3] sm:$0x1]  ;;  %289 = vst [vmem:[%s254_s26 + $0x4] sm:$0x3] %v257_v5  ;;  %290 = vst [vmem:[%s254_s26 + $0x6] sm:$0x3] %v258_v9 }
  0x15   : > { %v267_v11 = vcvt.s32.f32 %v263_v3  ;;  %v266_v12 = vunpack.c.0.s8 %v262_v10  ;;  %v268_v13 = vcvt.s32.f32 %v264_v7  ;;  %v269_v14 = vcvt.s32.f32 %v265_v8 }
  0x17   : > { %v271_v15 = vmul.f32 %v267_v11, %v255_v0  ;;  %v270_v16 = vcvt.s32.f32 %v266_v12  ;;  %v272_v17 = vmul.f32 %v268_v13, %v256_v2  ;;  %v273_v18 = vmul.f32 %v269_v14, %v257_v5 }
  0x19   : > { %283 = vst [vmem:[%s245_s29] sm:$0x3] %v271_v15  ;;  %v274_v19 = vmul.f32 %v270_v16, %v258_v9  ;;  %284 = vst [vmem:[%s245_s29 + $0x2] sm:$0x3] %v272_v17 }
  0x1a   : > { %285 = vst [vmem:[%s245_s29 + $0x4] sm:$0x3] %v273_v18 }
  0x1b   : > { %286 = vst [vmem:[%s245_s29 + $0x6] sm:$0x3] %v274_v19 }
  0x1c PF: > { %s14_s14 = sadd.s32 1, %s511_s14   ;;  %s576_s12 = smov %s507_s13 }
  0x1d   : > { %p11_p5 = scmp.ge.s32.totalorder %s14_s14, 4   ;;  %s577_s13 = smov %s579_s15 }
  0x1f   :  { %13 = sbr.rel (!%p11_p5) target bundleno = 2 (0x2), region = 73 }

</bundles_post_ra>
